<compile_context>
chip_gen: v5e
topology: v5e:2x2
jax: 0.10.0
libtpu: 0.0.40
codegen_flags: <defaults>
</compile_context>

<pallas_src>
import jax
import jax.numpy as jnp
from jax.experimental import pallas as pl
from jax.experimental.pallas import tpu as pltpu

BN_EPS = 1e-5
LANE = 128


def _round_up(a, b):
    return (a + b - 1) // b * b


def _msp_mlp_kernel(x_ref, w1_ref, b1_ref, w2_ref, b2_ref, out_ref):
    """Fused MLP encoder forward for one tile of nodes.

    x_ref  : (TN, F)   node-feature tile (bf16)
    w1_ref : (F, H)    Linear1 weight, stored [in, out] (bf16)
    b1_ref : (1, H)    Linear1 bias (f32)
    w2_ref : (H, Cp)   Linear2 weight with eval-BN folded in, lane-padded (bf16)
    b2_ref : (1, Cp)   Linear2 bias with eval-BN folded in, lane-padded (f32)
    out_ref: (TN, Cp)  logits tile (f32)
    """
    # Linear1 (bf16 x bf16 -> f32 accumulate on the MXU) + bias + ReLU.
    h = jnp.dot(x_ref[...], w1_ref[...], preferred_element_type=jnp.float32)
    h = jnp.maximum(h + b1_ref[...], 0.0)
    # BatchNorm1d (eval) folded into w2/b2 by the wrapper; Dropout is identity in eval.
    logits = jnp.dot(h.astype(w2_ref.dtype), w2_ref[...],
                     preferred_element_type=jnp.float32)
    out_ref[...] = (logits + b2_ref[...]).astype(out_ref.dtype)


def msp_forward(x, edge_index, params, *, tile_n=None, vmem_budget_bytes=24 << 20):
    """MSP.forward (MLP backbone, eval mode). Returns logits [N, C]."""
    del edge_index  # MLP backbone ignores graph structure.
    N, F = x.shape
    H = params["w1"].shape[1]
    C = params["w2"].shape[1]

    # --- Fold eval-mode BatchNorm1d into Linear2 (exact; ReLU precedes BN) ---
    scale = params["gamma"] * jax.lax.rsqrt(params["running_var"] + BN_EPS)   # (1, H)
    shift = params["beta"] - params["running_mean"] * scale                   # (1, H)
    w2f = scale.reshape(H, 1) * params["w2"]                                  # (H, C)
    b2f = shift @ params["w2"] + params["b2"]                                 # (1, C)

    # --- Lane-dense output: pad class dim to a multiple of 128 with zero columns ---
    C_pad = _round_up(C, LANE)
    w2f = jnp.pad(w2f, ((0, 0), (0, C_pad - C)))
    b2f = jnp.pad(b2f, ((0, 0), (0, C_pad - C)))

    # --- bf16 matmul operands, f32 everything else ---
    x_bf = x.astype(jnp.bfloat16)
    w1_bf = params["w1"].astype(jnp.bfloat16)
    w2_bf = w2f.astype(jnp.bfloat16)
    b1 = params["b1"].astype(jnp.float32)
    b2 = b2f.astype(jnp.float32)

    # --- Node tiling: VMEM-budgeted, bf16-sublane aligned, >=2 tiles when possible ---
    row_align = 16  # bf16 packs 16 rows per sublane group
    if tile_n is None:
        # double-buffered x tile + double-buffered out tile, per row of nodes
        per_row = 2 * (F * 2) + 2 * (C_pad * 4)
        t = vmem_budget_bytes // max(per_row, 1)
        t = max(row_align, min(512, (t // row_align) * row_align))
        # Prefer at least two grid steps so v7x can shard the parallel axis over 2 TCs.
        t = min(t, max(row_align, _round_up(pl.cdiv(N, 2), row_align)))
        tile_n = t
    else:
        tile_n = max(row_align, _round_up(tile_n, row_align))

    N_pad = _round_up(N, tile_n)
    if N_pad != N:
        x_bf = jnp.pad(x_bf, ((0, N_pad - N), (0, 0)))

    grid = (N_pad // tile_n,)

    def full2d(arr):
        # Small, grid-invariant parameter tensor: one whole-array block (stays resident).
        return pl.BlockSpec(arr.shape, lambda i: (0, 0))

    flops = 2 * N_pad * (F * H + H * C_pad)
    bytes_accessed = (x_bf.size * 2 + w1_bf.size * 2 + w2_bf.size * 2
                      + b1.size * 4 + b2.size * 4 + N_pad * C_pad * 4)

    out = pl.pallas_call(
        _msp_mlp_kernel,
        out_shape=jax.ShapeDtypeStruct((N_pad, C_pad), jnp.float32),
        grid_spec=pltpu.PrefetchScalarGridSpec(
            num_scalar_prefetch=0,
            grid=grid,
            in_specs=[
                pl.BlockSpec((tile_n, F), lambda i: (i, 0)),   # x: tiled over nodes
                full2d(w1_bf),
                full2d(b1),
                full2d(w2_bf),
                full2d(b2),
            ],
            out_specs=pl.BlockSpec((tile_n, C_pad), lambda i: (i, 0)),
        ),
        compiler_params=pltpu.CompilerParams(
            dimension_semantics=("parallel",),
            vmem_limit_bytes=32 * 1024 * 1024,
        ),
        cost_estimate=pl.CostEstimate(flops=flops, transcendentals=0,
                                      bytes_accessed=bytes_accessed),
    )(x_bf, w1_bf, b1, w2_bf, b2)

    return out[:N, :C]


def init_params(key, num_features, hidden_channels, num_classes):
    """Deterministic synthetic parameters matching the module's layer shapes."""
    k1, k2, k3, k4, k5, k6 = jax.random.split(key, 6)
    w1 = jax.random.normal(k1, (num_features, hidden_channels), jnp.float32) * 0.1
    b1 = jax.random.normal(k2, (1, hidden_channels), jnp.float32) * 0.1
    w2 = jax.random.normal(k3, (hidden_channels, num_classes), jnp.float32) * 0.1
    b2 = jax.random.normal(k4, (1, num_classes), jnp.float32) * 0.1
    gamma = 1.0 + 0.05 * jax.random.normal(k5, (1, hidden_channels), jnp.float32)
    beta = 0.05 * jax.random.normal(k6, (1, hidden_channels), jnp.float32)
    running_mean = jnp.zeros((1, hidden_channels), jnp.float32)
    running_var = jnp.ones((1, hidden_channels), jnp.float32)
    return dict(w1=w1, b1=b1, w2=w2, b2=b2, gamma=gamma, beta=beta,
                running_mean=running_mean, running_var=running_var)


def reference_forward(x, params):
    """Plain-JAX f32 reference of the original (unfolded) forward."""
    h = jnp.maximum(x @ params["w1"] + params["b1"], 0.0)
    h = (h - params["running_mean"]) / jnp.sqrt(params["running_var"] + BN_EPS)
    h = h * params["gamma"] + params["beta"]
    return h @ params["w2"] + params["b2"]


if __name__ == "__main__":
    # Small shapes consistent with the module: N graph nodes with num_features each,
    # hidden_channels for the MLP encoder, num_classes logits out. edge_index present
    # but unused by the MLP backbone.
    N = 256
    num_features = 32
    hidden_channels = 64
    num_classes = 7
    num_edges = 512

    key = jax.random.PRNGKey(0)
    kx, ke, kp = jax.random.split(key, 3)

    x = jax.random.normal(kx, (N, num_features), jnp.float32)                 # dataset.x
    edge_index = jax.random.randint(ke, (2, num_edges), 0, N, jnp.int32)      # dataset.edge_index
    params = init_params(kp, num_features, hidden_channels, num_classes)

    logits = msp_forward(x, edge_index, params)
    logits = jax.block_until_ready(logits)

    ref = reference_forward(x, params)
    assert logits.shape == (N, num_classes)
    # bf16 matmul operands -> loosened tolerance vs. the full-f32 reference.
    assert jnp.allclose(logits, ref, atol=5e-2, rtol=5e-2), "mismatch vs. JAX reference"

    print("KERNEL_OK")
</pallas_src>

<mosaic_0001>
module attributes {stable_mosaic.version = 11 : i64} {
  func.func @_msp_mlp_kernel(%arg0: i32, %arg1: memref<128x32xbf16, #tpu.memory_space<vmem>>, %arg2: memref<32x64xbf16, #tpu.memory_space<vmem>>, %arg3: memref<1x64xf32, #tpu.memory_space<vmem>>, %arg4: memref<64x128xbf16, #tpu.memory_space<vmem>>, %arg5: memref<1x128xf32, #tpu.memory_space<vmem>>, %arg6: memref<128x128xf32, #tpu.memory_space<vmem>>) attributes {dimension_semantics = [#tpu.dimension_semantics<parallel>], iteration_bounds = array<i64: 2>, scalar_prefetch = 0 : i64, scratch_operands = 0 : i64, tpu.core_type = #tpu.core_type<tc>, window_params = [{transform_indices = @transform_0, window_bounds = array<i64: 128, 32>}, {pipeline_mode = #tpu.pipeline_mode<synchronous>, transform_indices = @transform_1, window_bounds = array<i64: 32, 64>}, {pipeline_mode = #tpu.pipeline_mode<synchronous>, transform_indices = @transform_2, window_bounds = array<i64: 1, 64>}, {pipeline_mode = #tpu.pipeline_mode<synchronous>, transform_indices = @transform_3, window_bounds = array<i64: 64, 128>}, {pipeline_mode = #tpu.pipeline_mode<synchronous>, transform_indices = @transform_4, window_bounds = array<i64: 1, 128>}, {transform_indices = @transform_5, window_bounds = array<i64: 128, 128>}]} {
    %c0 = arith.constant 0 : index
    %c0_0 = arith.constant 0 : index
    %0 = vector.load %arg1[%c0, %c0_0] : memref<128x32xbf16, #tpu.memory_space<vmem>>, vector<128x32xbf16>
    %c0_1 = arith.constant 0 : index
    %c0_2 = arith.constant 0 : index
    %1 = vector.load %arg2[%c0_1, %c0_2] : memref<32x64xbf16, #tpu.memory_space<vmem>>, vector<32x64xbf16>
    %cst = arith.constant dense<0.000000e+00> : vector<128x64xf32>
    %2 = tpu.matmul %0, %1, %cst {dimension_numbers = #tpu.dot_dimension_numbers<[1], [0], [0], [1], [0, 0, 1, 1], [], []>} : vector<128x32xbf16>, vector<32x64xbf16>, vector<128x64xf32> -> vector<128x64xf32>
    %c0_3 = arith.constant 0 : index
    %c0_4 = arith.constant 0 : index
    %3 = vector.load %arg3[%c0_3, %c0_4] : memref<1x64xf32, #tpu.memory_space<vmem>>, vector<1x64xf32>
    %4 = vector.broadcast %3 : vector<1x64xf32> to vector<128x64xf32>
    %5 = arith.addf %2, %4 : vector<128x64xf32>
    %cst_5 = arith.constant 0.000000e+00 : f32
    %6 = vector.broadcast %cst_5 : f32 to vector<128x64xf32>
    %7 = arith.maximumf %5, %6 : vector<128x64xf32>
    %8 = arith.truncf %7 : vector<128x64xf32> to vector<128x64xbf16>
    %c0_6 = arith.constant 0 : index
    %c0_7 = arith.constant 0 : index
    %9 = vector.load %arg4[%c0_6, %c0_7] : memref<64x128xbf16, #tpu.memory_space<vmem>>, vector<64x128xbf16>
    %cst_8 = arith.constant dense<0.000000e+00> : vector<128x128xf32>
    %10 = tpu.matmul %8, %9, %cst_8 {dimension_numbers = #tpu.dot_dimension_numbers<[1], [0], [0], [1], [0, 0, 1, 1], [], []>} : vector<128x64xbf16>, vector<64x128xbf16>, vector<128x128xf32> -> vector<128x128xf32>
    %c0_9 = arith.constant 0 : index
    %c0_10 = arith.constant 0 : index
    %11 = vector.load %arg5[%c0_9, %c0_10] : memref<1x128xf32, #tpu.memory_space<vmem>>, vector<1x128xf32>
    %12 = vector.broadcast %11 : vector<1x128xf32> to vector<128x128xf32>
    %13 = arith.addf %10, %12 : vector<128x128xf32>
    %c0_11 = arith.constant 0 : index
    %c0_12 = arith.constant 0 : index
    %14 = vector.load %arg6[%c0_11, %c0_12] : memref<128x128xf32, #tpu.memory_space<vmem>>, vector<128x128xf32>
    tpu.vector_store %arg6[%c0_11, %c0_12], %13 {strides = array<i32>} : memref<128x128xf32, #tpu.memory_space<vmem>>, vector<128x128xf32>,
    return
  }
  func.func @transform_0(%arg0: i32) -> (i32, i32) {
    %c0_i32 = arith.constant 0 : i32
    %c0_i32_0 = arith.constant 0 : i32
    return %arg0, %c0_i32 : i32, i32
  }
  func.func @transform_1(%arg0: i32) -> (i32, i32) {
    %c0_i32 = arith.constant 0 : i32
    %c0_i32_0 = arith.constant 0 : i32
    %c0_i32_1 = arith.constant 0 : i32
    return %c0_i32, %c0_i32_0 : i32, i32
  }
  func.func @transform_2(%arg0: i32) -> (i32, i32) {
    %c0_i32 = arith.constant 0 : i32
    %c0_i32_0 = arith.constant 0 : i32
    %c0_i32_1 = arith.constant 0 : i32
    return %c0_i32, %c0_i32_0 : i32, i32
  }
  func.func @transform_3(%arg0: i32) -> (i32, i32) {
    %c0_i32 = arith.constant 0 : i32
    %c0_i32_0 = arith.constant 0 : i32
    %c0_i32_1 = arith.constant 0 : i32
    return %c0_i32, %c0_i32_0 : i32, i32
  }
  func.func @transform_4(%arg0: i32) -> (i32, i32) {
    %c0_i32 = arith.constant 0 : i32
    %c0_i32_0 = arith.constant 0 : i32
    %c0_i32_1 = arith.constant 0 : i32
    return %c0_i32, %c0_i32_0 : i32, i32
  }
  func.func @transform_5(%arg0: i32) -> (i32, i32) {
    %c0_i32 = arith.constant 0 : i32
    %c0_i32_0 = arith.constant 0 : i32
    return %arg0, %c0_i32 : i32, i32
  }
}

</mosaic_0001>

<bundles_post_ra>
// kernel: tpu_custom_call.1
= control target key start
LH: loop header
LB: loop body
LE: loop exit
PB: predicated region body
PF: predicated region fallthrough
CT: control target
= control target key end

     0   :  { %10 = vsyncpa [#allocation3], 0  ;;  %s996_s0 = inlined_call_operand.vmem [shape: bf16[256,32], index: 0, kind: input, shape index: {}]   ;;  %s997_s1 = inlined_call_operand.vmem [shape: bf16[32,64], index: 1, kind: input, shape index: {}]   ;;  %s998_s2 = inlined_call_operand.vmem [shape: f32[1,64], index: 2, kind: input, shape index: {}]   ;;  %s999_s3 = inlined_call_operand.vmem [shape: bf16[64,128], index: 3, kind: input, shape index: {}]   ;;  %s1000_s4 = inlined_call_operand.vmem [shape: f32[1,128], index: 4, kind: input, shape index: {}]   ;;  %s1001_s5 = inlined_call_operand.hbm [shape: f32[256,128], index: 5, kind: output, shape index: {}]  }
   0x1   :  { %12 = vsyncpa [#allocation3 + $0x1], 0  ;;  %s849_s18 = smov 0   ;;  %s851_s19 = smov 0  }
   0x2   :  { %s853_s20 = smov 0   ;;  %s855_s21 = smov 0  }
   0x3 LB: > { %s870_s22 = sadd.s32 4294967295, %s815_s21   ;;  %s605_s23 = sadd.s32 4294967294, %s815_s21   ;;  %s815_s21 = sphi %s855_s21, %s1007_s21   ;;  %s811_s20 = sphi %s853_s20, %s1006_s20   ;;  %s807_s19 = sphi %s851_s19, %s1005_s19   ;;  %s803_s18 = sphi %s849_s18, %s1004_s18  }
   0x4   : > { %s874_s24 = sadd.s32 1, %s815_s21   ;;  %s135_s25 = sadd.s32 1, %s811_s20 }
   0x5   : > { %s132_s26 = ssub.s32 %s815_s21, %s874_s24  ;;  %p145_p0 = scmp.ne.s32.totalorder %s811_s20, %s807_s19 }
   0x6   : > { %p133_p1 = scmp.eq.s32.totalorder %s132_s26, 0  ;;  %p146_p2 = scmp.eq.s32.totalorder %s870_s22, 1 }
   0x7   : > { %p151_p3 = scmp.ne.s32.totalorder %s807_s19, %s803_s18  ;;  %p152_p4 = scmp.eq.s32.totalorder %s605_s23, 1 }
   0x8   : > { %s885_s27 = scalar_select %p133_p1, %s811_s20, %s135_s25  }
   0x9   : > { %p887_p5 = por %p146_p2, %p145_p0  ;;  %p891_p6 = por %p152_p4, %p151_p3 }
   0xa   : > { %p608_p7 = scmp.ge.s32.totalorder %s815_s21, 1  ;;  %p191_p8 = scmp.lt.s32.totalorder %s815_s21, 3 }
   0xc   : > { %p192_p9 = pnand %p608_p7, %p191_p8 }
   0xd   : > { %s610_s7 = sshll.u32 (!%p192_p9), %s870_s22, 4  ;;  %s216_s8 = sand.u32 (!%p192_p9), 1, %s807_s19  }
   0xe   : > { %195 = sbr.rel (%p192_p9) target bundleno = 425 (0x1a9), region = 40  ;;  %p220_p10 = scmp.lt.s32.totalorder (!%p192_p9), %s610_s7, 31 }
   0xf   : > { %s609_s9 = sshll.u32 (!%p192_p9), %s216_s8, 7  ;;  %s528_s25 = scalar_lea.sflag (!%p192_p9), [#allocation3], %s216_s8 }
  0x10   : > { %s944_s12 = scalar_lea.vmem (!%p192_p9), [#allocation2], %s609_s9 }
  0x11   : > { %s540_s17 = sshll.u32 (!%p192_p9), %s944_s12, 4  ;;  %s541_s17 = int_to_ptr.vmem [resolvable:$true] %s540_s17 }
  0x13   : > { %v698_v0 = vld [vmem:[%s997_s1 + $0x8] sm:$0xff]  ;;  %v697_v1 = vld [vmem:[%s997_s1] sm:$0xff]  ;;  %s1009_s7 = smov (!%p220_p10, %s610_s7), 31  ;;  %vm303_vm0 = vcmask 261120   ;;  %v702_v10 = vld [vmem:[%s999_s3 + $0x18] sm:$0xff]  ;;  %vm437_vm1 = vcmask 523264  }
  0x14   : > { %334 = vmatpush.bf16.msra.mxu0 %v698_v0  ;;  %704 = vmatpush.bf16.msra.mxu3 %v698_v0  ;;  %s611_s10 = sshll.u32 %s1009_s7, 2  ;;  %v701_v11 = vld [vmem:[%s999_s3 + $0x10] sm:$0xff]  ;;  %v700_v12 = vld [vmem:[%s999_s3 + $0x8] sm:$0xff]  ;;  %v699_v13 = vld [vmem:[%s999_s3] sm:$0xff]  ;;  %s773_s7 = scalar_lea.hbm %s1001_s5, 256 }
  0x15   : > { %s223_s13 = scalar_lea.vmem %s996_s0, %s611_s10  ;;  %466 = vmatpush.bf16.msra.mxu1 %v702_v10  ;;  %706 = vmatpush.bf16.msra.mxu2 %v702_v10  ;;  %v751_v15 = vld [vmem:[%s998_s2] ss:$0 sm:$0xff] }
  0x16   : > { %v689_v2 = vld [vmem:[%s223_s13] sm:$0xff]  ;;  %v690_v3 = vld [vmem:[%s223_s13 + $0x8] sm:$0xff]  ;;  %v691_v4 = vld [vmem:[%s223_s13 + $0x10] sm:$0xff] }
  0x17   : > { %v694_v5 = vld [vmem:[%s223_s13 + $0x28] sm:$0xff]  ;;  %v692_v6 = vld [vmem:[%s223_s13 + $0x18] sm:$0xff]  ;;  %v695_v7 = vld [vmem:[%s223_s13 + $0x30] sm:$0xff] }
  0x18   : > { %335 = vmatpush.bf16.msra.mxu0 %v697_v1  ;;  %705 = vmatpush.bf16.msra.mxu3 %v697_v1  ;;  %v693_v8 = vld [vmem:[%s223_s13 + $0x20] sm:$0xff]  ;;  %v696_v9 = vld [vmem:[%s223_s13 + $0x38] sm:$0xff]  ;;  %s703_s13 = sshll.u32 %s870_s22, 7 }
  0x19   : > { %467 = vmatpush.bf16.msra.mxu1 %v701_v11  ;;  %707 = vmatpush.bf16.msra.mxu2 %v701_v11  ;;  %s539_s16 = scalar_lea.hbm %s1001_s5, %s703_s13 }
  0x1a   : > { %s542_s23 = sshll.u32 %s539_s16, 4  ;;  %s543_s23 = int_to_ptr.hbm [resolvable:$true] %s542_s23 }
  0x1b   : > { %652 = vmatmul.msk.bf16.vlgmr.msra.gmra.mxu0 %vm303_vm0, %v689_v2  ;;  %657 = vmatmul.msk.bf16.vlgmr.msra.gmra.mxu3 %vm303_vm0, %v694_v5  ;;  %s767_s26 = sshra.s32 %s543_s23, 4  ;;  %s768_s26 = int_to_ptr.hbm [resolvable:$true] %s767_s26 }
  0x1c   : > { %s769_s22 = scalar_lea.hbm %s768_s26, 128  ;;  %p774_p0 = scmp.lt.s32.totalorder %s768_s26, %s1001_s5 }
  0x1d   : > { %468 = vmatpush.bf16.msra.mxu1 %v700_v12  ;;  %708 = vmatpush.bf16.msra.mxu2 %v700_v12  ;;  %p770_p11 = scmp.ne.s32.totalorder %s768_s26, %s769_s22  ;;  %p775_p1 = scmp.lt.s32.totalorder %s773_s7, %s769_s22 }
  0x1f   : > { %p771_p12 = pnand %p770_p11, %p887_p5  ;;  %p776_p2 = por %p775_p1, %p774_p0 }
  0x21   : > { %469 = vmatpush.bf16.msra.mxu1 %v699_v13  ;;  %709 = vmatpush.bf16.msra.mxu2 %v699_v13  ;;  %p772_p13 = pneg %p771_p12 }
  0x23   : > { %p777_p3 = pnand %p776_p2, %p772_p13 }
  0x2b   : > { %653 = vmatmul.msk.bf16.gmra.mxu0 %vm303_vm0, %v690_v3  ;;  %658 = vmatmul.msk.bf16.gmra.mxu3 %vm303_vm0, %v695_v7  ;;  %v752_v7 = vld [vmem:[%s1000_s4] ss:$0 sm:$0xff] }
  0x3b   : > { %654 = vmatmul.msk.bf16.gmra.mxu0 %vm303_vm0, %v691_v4  ;;  %659 = vmatmul.msk.bf16.gmra.mxu3 %vm303_vm0, %v696_v9 }
  0x4b   : > { %655 = vmatmul.msk.bf16.gmra.mxu0 %vm303_vm0, %v692_v6 }
  0x5b   : > { %656 = vmatmul.msk.bf16.gmra.mxu0 %vm303_vm0, %v693_v8 }
  0x98   : > { %v337_v14 = vpop.f32.mrf.mxu0 }
  0x99   : > { %v338_v16 = vadd.f32 %v751_v15, %v337_v14 }
  0x9b   : > { %v377_v19 = vmax.f32 %v338_v16, 0.0 }
  0x9e   : > { %v362_v44 = vpop.f32.mrf.mxu3 }
  0x9f   : > { %v363_v53 = vadd.f32 %v751_v15, %v362_v44 }
  0xa0   : > { %v339_v17 = vpop.f32.mrf.mxu0 }
  0xa1   : > { %v340_v18 = vadd.f32 %v751_v15, %v339_v17  ;;  %v387_v55 = vmax.f32 %v363_v53, 0.0 }
  0xa3   : > { %v378_v20 = vmax.f32 %v340_v18, 0.0 }
  0xa5   : > { %v393_v21 = vpack.c.bf16 %v378_v20, %v377_v19 }
  0xa6   : > { %v364_v48 = vpop.f32.mrf.mxu3 }
  0xa7   : > { %676 = vmatmul.msk.bf16.vlgmr.msra.gmra.mxu1 %vm437_vm1, %v393_v21  ;;  %v365_v54 = vadd.f32 %v751_v15, %v364_v48 }
  0xa8   : > { %v342_v22 = vpop.f32.mrf.mxu0 }
  0xa9   : > { %v343_v23 = vadd.f32 %v751_v15, %v342_v22  ;;  %v388_v56 = vmax.f32 %v365_v54, 0.0 }
  0xab   : > { %v379_v26 = vmax.f32 %v343_v23, 0.0  ;;  %v398_v57 = vpack.c.bf16 %v388_v56, %v387_v55 }
  0xae   : > { %v367_v52 = vpop.f32.mrf.mxu3 }
  0xaf   : > { %v368_v59 = vadd.f32 %v751_v15, %v367_v52 }
  0xb0   : > { %v344_v24 = vpop.f32.mrf.mxu0 }
  0xb1   : > { %v345_v25 = vadd.f32 %v751_v15, %v344_v24  ;;  %v389_v62 = vmax.f32 %v368_v59, 0.0 }
  0xb3   : > { %v380_v27 = vmax.f32 %v345_v25, 0.0 }
  0xb5   : > { %v394_v28 = vpack.c.bf16 %v380_v27, %v379_v26 }
  0xb6   : > { %v369_v58 = vpop.f32.mrf.mxu3 }
  0xb7   : > { %677 = vmatmul.msk.bf16.gmra.mxu1 %vm437_vm1, %v394_v28  ;;  %v370_v60 = vadd.f32 %v751_v15, %v369_v58 }
  0xb8   : > { %v347_v29 = vpop.f32.mrf.mxu0 }
  0xb9   : > { %v348_v30 = vadd.f32 %v751_v15, %v347_v29  ;;  %v390_v63 = vmax.f32 %v370_v60, 0.0 }
  0xbb   : > { %v381_v33 = vmax.f32 %v348_v30, 0.0  ;;  %v399_v0 = vpack.c.bf16 %v390_v63, %v389_v62 }
  0xbe   : > { %v372_v61 = vpop.f32.mrf.mxu3 }
  0xbf   : > { %v373_v2 = vadd.f32 %v751_v15, %v372_v61 }
  0xc0   : > { %v349_v31 = vpop.f32.mrf.mxu0 }
  0xc1   : > { %v350_v32 = vadd.f32 %v751_v15, %v349_v31  ;;  %v391_v4 = vmax.f32 %v373_v2, 0.0 }
  0xc3   : > { %v382_v34 = vmax.f32 %v350_v32, 0.0 }
  0xc5   : > { %v395_v35 = vpack.c.bf16 %v382_v34, %v381_v33 }
  0xc6   : > { %v374_v1 = vpop.f32.mrf.mxu3 }
  0xc7   : > { %678 = vmatmul.msk.bf16.gmra.mxu1 %vm437_vm1, %v395_v35  ;;  %v375_v3 = vadd.f32 %v751_v15, %v374_v1 }
  0xc8   : > { %v352_v36 = vpop.f32.mrf.mxu0 }
  0xc9   : > { %v353_v37 = vadd.f32 %v751_v15, %v352_v36  ;;  %v392_v5 = vmax.f32 %v375_v3, 0.0 }
  0xcb   : > { %v383_v40 = vmax.f32 %v353_v37, 0.0  ;;  %v400_v6 = vpack.c.bf16 %v392_v5, %v391_v4 }
  0xd0   : > { %v354_v38 = vpop.f32.mrf.mxu0 }
  0xd1   : > { %v355_v39 = vadd.f32 %v751_v15, %v354_v38 }
  0xd3   : > { %v384_v41 = vmax.f32 %v355_v39, 0.0 }
  0xd5   : > { %v396_v42 = vpack.c.bf16 %v384_v41, %v383_v40 }
  0xd7   : > { %679 = vmatmul.msk.bf16.gmra.mxu1 %vm437_vm1, %v396_v42 }
  0xd8   : > { %v357_v43 = vpop.f32.mrf.mxu0 }
  0xd9   : > { %v358_v45 = vadd.f32 %v751_v15, %v357_v43 }
  0xdb   : > { %v385_v49 = vmax.f32 %v358_v45, 0.0 }
  0xe0   : > { %v359_v46 = vpop.f32.mrf.mxu0 }
  0xe1   : > { %v360_v47 = vadd.f32 %v751_v15, %v359_v46 }
  0xe3   : > { %v386_v50 = vmax.f32 %v360_v47, 0.0 }
  0xe5   : > { %v397_v51 = vpack.c.bf16 %v386_v50, %v385_v49 }
  0xe7   : > { %680 = vmatmul.msk.bf16.vlgmr.msra.gmra.mxu2 %vm437_vm1, %v397_v51 }
  0xf7   : > { %681 = vmatmul.msk.bf16.gmra.mxu2 %vm437_vm1, %v398_v57 }
 0x107   : > { %682 = vmatmul.msk.bf16.gmra.mxu2 %vm437_vm1, %v399_v0 }
 0x117   : > { %683 = vmatmul.msk.bf16.gmra.mxu2 %vm437_vm1, %v400_v6 }
 0x124   : > { %v471_v8 = vpop.f32.mrf.mxu1 }
 0x125   : > { %v472_v9 = vadd.f32 %v752_v7, %v471_v8 }
 0x127   : > { %511 = vst [vmem:[%s944_s12] sm:$0xff] %v472_v9 }
 0x12c   : > { %v473_v10 = vpop.f32.mrf.mxu1 }
 0x12d   : > { %v474_v11 = vadd.f32 %v752_v7, %v473_v10 }
 0x12f   : > { %512 = vst [vmem:[%s944_s12 + $0x8] sm:$0xff] %v474_v11 }
 0x134   : > { %v476_v12 = vpop.f32.mrf.mxu1 }
 0x135   : > { %v477_v13 = vadd.f32 %v752_v7, %v476_v12 }
 0x137   : > { %513 = vst [vmem:[%s944_s12 + $0x10] sm:$0xff] %v477_v13 }
 0x13c   : > { %v478_v14 = vpop.f32.mrf.mxu1 }
 0x13d   : > { %v479_v15 = vadd.f32 %v752_v7, %v478_v14 }
 0x13f   : > { %514 = vst [vmem:[%s944_s12 + $0x18] sm:$0xff] %v479_v15 }
 0x144   : > { %v481_v16 = vpop.f32.mrf.mxu1 }
 0x145   : > { %v482_v17 = vadd.f32 %v752_v7, %v481_v16 }
 0x147   : > { %515 = vst [vmem:[%s944_s12 + $0x20] sm:$0xff] %v482_v17 }
 0x14c   : > { %v483_v18 = vpop.f32.mrf.mxu1 }
 0x14d   : > { %v484_v19 = vadd.f32 %v752_v7, %v483_v18 }
 0x14f   : > { %516 = vst [vmem:[%s944_s12 + $0x28] sm:$0xff] %v484_v19 }
 0x154   : > { %v486_v20 = vpop.f32.mrf.mxu1 }
 0x155   : > { %v487_v21 = vadd.f32 %v752_v7, %v486_v20 }
 0x157   : > { %517 = vst [vmem:[%s944_s12 + $0x30] sm:$0xff] %v487_v21 }
 0x15c   : > { %v488_v22 = vpop.f32.mrf.mxu1 }
 0x15d   : > { %v489_v23 = vadd.f32 %v752_v7, %v488_v22 }
 0x15f   : > { %518 = vst [vmem:[%s944_s12 + $0x38] sm:$0xff] %v489_v23 }
 0x16a   : > { %v491_v24 = vpop.f32.mrf.mxu2 }
 0x16b   : > { %v492_v25 = vadd.f32 %v752_v7, %v491_v24 }
 0x16d   : > { %519 = vst [vmem:[%s944_s12 + $0x40] sm:$0xff] %v492_v25 }
 0x172   : > { %v493_v26 = vpop.f32.mrf.mxu2 }
 0x173   : > { %v494_v27 = vadd.f32 %v752_v7, %v493_v26 }
 0x175   : > { %520 = vst [vmem:[%s944_s12 + $0x48] sm:$0xff] %v494_v27 }
 0x17a   : > { %v496_v28 = vpop.f32.mrf.mxu2 }
 0x17b   : > { %v497_v29 = vadd.f32 %v752_v7, %v496_v28 }
 0x17d   : > { %521 = vst [vmem:[%s944_s12 + $0x50] sm:$0xff] %v497_v29 }
 0x182   : > { %v498_v30 = vpop.f32.mrf.mxu2 }
 0x183   : > { %v499_v31 = vadd.f32 %v752_v7, %v498_v30 }
 0x185   : > { %522 = vst [vmem:[%s944_s12 + $0x58] sm:$0xff] %v499_v31 }
 0x18a   : > { %v501_v32 = vpop.f32.mrf.mxu2 }
 0x18b   : > { %v502_v33 = vadd.f32 %v752_v7, %v501_v32 }
 0x18d   : > { %523 = vst [vmem:[%s944_s12 + $0x60] sm:$0xff] %v502_v33 }
 0x192   : > { %v503_v34 = vpop.f32.mrf.mxu2 }
 0x193   : > { %v504_v35 = vadd.f32 %v752_v7, %v503_v34 }
 0x195   : > { %524 = vst [vmem:[%s944_s12 + $0x68] sm:$0xff] %v504_v35 }
 0x19a   : > { %v506_v36 = vpop.f32.mrf.mxu2 }
 0x19b   : > { %v507_v37 = vadd.f32 %v752_v7, %v506_v36 }
 0x19d   : > { %525 = vst [vmem:[%s944_s12 + $0x70] sm:$0xff] %v507_v37 }
 0x1a2   : > { %v508_v38 = vpop.f32.mrf.mxu2 }
 0x1a3   : > { %v509_v39 = vadd.f32 %v752_v7, %v508_v38 }
 0x1a5   : > { %526 = vst [vmem:[%s944_s12 + $0x78] sm:$0xff] %v509_v39 }
 0x1a6   : > { %780 = shalt.err (!%p777_p3)
}
 0x1a7   : > { %s817_s8 = smov 128   ;;  %s818_s11 = smov 8  }
 0x1a8   : > { %710 = dma.vmem_to_hbm [thread:$0]  (%p887_p5), %s541_s17, 2048, %s543_s23, %s528_s25, %s817_s8, %s817_s8, %s818_s11  }
 0x1a9 PF: > { %p716_p4 = scmp.ge.s32.totalorder %s815_s21, 2  ;;  %s557_s12 = sand.u32 1, %s803_s18  }
 0x1aa   : > { %s558_s13 = scalar_lea.sflag [#allocation3], %s557_s12 }
 0x1ab   : > { %p713_p7 = pnand %p716_p4, %p891_p6 }
 0x1ad   : > { %p714_p8 = pneg %p713_p7 }
 0x1af   : > { %798 = dma.done.wait (%p714_p8), %s558_s13, 2048  }
 0x1b0   : > { %800 = vsyncadd (%p714_p8), %s558_s13, 4294965248  ;;  %p15_p9 = scmp.ge.s32.totalorder %s874_s24, 4   ;;  %s1004_s18 = smov %s807_s19 }
 0x1b1   : > { %s1005_s19 = smov %s811_s20  ;;  %s1006_s20 = smov %s885_s27 }
 0x1b2   : > { %s1007_s21 = smov %s874_s24  ;;  %17 = sbr.rel (!%p15_p9) target bundleno = 3 (0x3), region = 75 }
 0x1b7   :  { %564 = vsyncpa [#allocation3], 1 }
 0x1b8   :  { %566 = vsyncpa [#allocation3 + $0x1], 1 }

</bundles_post_ra>
